<compile_context>
chip_gen: v6e
topology: v6e:2x2x1
jax: 0.10.0
libtpu: 0.0.40
codegen_flags: <defaults>
</compile_context>

<pallas_src>
import functools

import jax
import jax.numpy as jnp
from jax.experimental import pallas as pl
from jax.experimental.pallas import tpu as pltpu


def _cheby_tconv_kernel(x_ref, adj_ref, m_ref, bias_ref, o_ref, y_slab,
                        *, K, b_blk, cil):
    """One grid step = b_blk batch elements, fully batch-stacked.

    x_ref:    (b_blk, N, c_in*L)        bf16  lane-dense activations
    adj_ref:  (b_blk, N, N)             bf16
    m_ref:    (K*c_in*L, c_out*L_out)   bf16  fused temporal-conv + channel-mix
    bias_ref: (1, c_out*L_out)          f32
    o_ref:    (b_blk, N, c_out*L_out)
    y_slab:   VMEM (b_blk*N, K*c_in*L)  bf16  stacked Chebyshev features
    """
    n = x_ref.shape[1]
    rows = b_blk * n

    x_bf = x_ref[...]                         # (b_blk, N, cil)
    a_bf = adj_ref[...]                       # (b_blk, N, N)

    # k = 0 : Y0 = X (T0 = identity is never materialized).
    y_slab[:, 0:cil] = x_bf.reshape(rows, cil)

    # k = 1 : Y1 = A @ X, batched over the whole block, f32 accumulation.
    y1 = jnp.einsum("bij,bjk->bik", a_bf, x_bf,
                    preferred_element_type=jnp.float32)
    y_slab[:, cil:2 * cil] = y1.astype(jnp.bfloat16).reshape(rows, cil)

    # k >= 2 : Y_k = 2 A Y_{k-1} - Y_{k-2}; only two f32 carries live at a time.
    y_m2 = x_bf.astype(jnp.float32)
    y_m1 = y1
    for k in range(2, K):
        y_k = 2.0 * jnp.einsum("bij,bjk->bik", a_bf, y_m1.astype(jnp.bfloat16),
                               preferred_element_type=jnp.float32) - y_m2
        y_slab[:, k * cil:(k + 1) * cil] = (
            y_k.astype(jnp.bfloat16).reshape(rows, cil))
        y_m2, y_m1 = y_m1, y_k

    # Fused temporal conv + channel mix: ONE batch-stacked matmul, one bias add,
    # one lane-dense store of the whole (b_blk, N, COL) block.
    z = jnp.dot(y_slab[...], m_ref[...], preferred_element_type=jnp.float32)
    z = z + bias_ref[...]                     # (1, COL) broadcasts over rows
    o_ref[...] = z.reshape(b_blk, n, -1).astype(o_ref.dtype)


def _pick_b_blk(batch, n_node, *, target_rows=256, min_steps=4):
    """Pick a batch block: fill >=target_rows MXU rows when possible while keeping
    >=min_steps grid steps (>=2 per v7x TensorCore); fall back gracefully."""
    divs = [d for d in range(1, batch + 1) if batch % d == 0]
    good = [d for d in divs if d * n_node >= target_rows and batch // d >= min_steps]
    if good:
        return min(good)
    ok = [d for d in divs if batch // d >= min_steps]
    if ok:
        return max(ok)
    ok2 = [d for d in divs if batch // d >= 2]
    return max(ok2) if ok2 else max(divs)


def _vmem_pad_bytes(shape, itemsize):
    """Approximate VMEM footprint of a tile with (8, 128) trailing-dim padding."""
    lead = 1
    for d in shape[:-2]:
        lead *= d
    sub = -(-shape[-2] // 8) * 8
    lane = -(-shape[-1] // 128) * 128
    return lead * sub * lane * itemsize


def t_cheby_conv_ds(x, adj, weight, bias, *, K, Kt, b_blk=None):
    """Forward pass of DGCN's T_cheby_conv_ds.

    x:      [B, c_in, N, L]          adj: [B, N, N]
    weight: [c_out, K*c_in, Kt]      (Conv2d weight, size-1 height dim squeezed)
    bias:   [c_out]
    returns [B, c_out, N, L_out], L_out = L + 2 - Kt + 1   (padding (0, 1))
    """
    B, c_in, N, L = x.shape
    c_out = weight.shape[0]
    assert weight.shape == (c_out, K * c_in, Kt)
    assert K >= 2, "module always stacks T0 and T1, so K >= 2"
    pad = 1
    L_out = L + 2 * pad - Kt + 1
    cil = c_in * L
    ROWS = K * cil
    COL = c_out * L_out

    if b_blk is None:
        b_blk = _pick_b_blk(B, N)
    assert B % b_blk == 0
    grid = B // b_blk

    # ---- wrapper-side layout plumbing (bf16 streamed operands) -----------------
    # TODO(synk): in a full model, keep activations in this lane-dense [B, N, c_in*L]
    # layout end-to-end; this transpose and the output transpose each add one HBM pass.
    x_r = jnp.transpose(x, (0, 2, 1, 3)).reshape(B, N, cil).astype(jnp.bfloat16)
    adj_bf = adj.astype(jnp.bfloat16)

    # Fused temporal-conv / channel-mix matrix (zero padding baked in):
    #   M[(k*c_in+c)*L + l, o*L_out + l'] = sum_t weight[o, c*K+k, t] * [l == l'+t-1]
    w_r = weight.reshape(c_out, c_in, K, Kt).astype(jnp.float32)       # [o, c, k, t]
    l_idx = jnp.arange(L)[:, None, None]
    lp_idx = jnp.arange(L_out)[None, :, None]
    t_idx = jnp.arange(Kt)[None, None, :]
    shift = (l_idx == lp_idx + t_idx - pad).astype(jnp.float32)        # [L, L_out, Kt]
    m_bf = (jnp.einsum("ockt,lpt->kclop", w_r, shift)
            .reshape(ROWS, COL).astype(jnp.bfloat16))

    bias_row = jnp.repeat(bias.reshape(-1).astype(jnp.float32), L_out).reshape(1, COL)

    # ---- VMEM budget (cap well below v7x's 64 MiB physical per-TC VMEM) --------
    streamed = (_vmem_pad_bytes((b_blk, N, cil), 2)        # x block   (bf16)
                + _vmem_pad_bytes((b_blk, N, N), 2)        # adj block (bf16)
                + _vmem_pad_bytes((b_blk, N, COL), 4))     # out block (f32)
    resident = (_vmem_pad_bytes((ROWS, COL), 2)            # M
                + _vmem_pad_bytes((1, COL), 4)             # bias
                + _vmem_pad_bytes((b_blk * N, ROWS), 2))   # scratch slab
    live = b_blk * N * (2 * cil + COL) * 4 * 2             # f32 carries + z (+margin)
    est = 2 * streamed + resident + live + (2 << 20)
    try:
        phys_vmem = pltpu.get_tpu_info().vmem_capacity_bytes
    except Exception:   # hardware query unavailable (e.g. interpret mode)
        phys_vmem = 128 * 1024 * 1024
    cap = min(48 * 1024 * 1024, (phys_vmem * 3) // 4)
    vmem_limit = int(min(cap, max(8 * 1024 * 1024, est)))

    flops = B * (2 * (K - 1) * N * N * cil + 2 * N * ROWS * COL)
    cost = pl.CostEstimate(
        flops=flops,
        transcendentals=0,
        bytes_accessed=(x_r.size * 2 + adj_bf.size * 2 + m_bf.size * 2
                        + bias_row.size * 4 + B * N * COL * x.dtype.itemsize),
    )

    kernel = functools.partial(_cheby_tconv_kernel, K=K, b_blk=b_blk, cil=cil)

    # NOTE: on v5e/v6e (128 MiB VMEM, lower HBM BW) pipeline_mode=pl.Buffered(3)
    # on the x/adj/out specs would further hide DMA latency; left at the default
    # depth here to keep the kernel portable to v7x's 64 MiB budget.
    out_flat = pl.pallas_call(
        kernel,
        out_shape=jax.ShapeDtypeStruct((B, N, COL), x.dtype),
        grid_spec=pltpu.PrefetchScalarGridSpec(
            num_scalar_prefetch=0,
            grid=(grid,),
            in_specs=[
                pl.BlockSpec((b_blk, N, cil), lambda i: (i, 0, 0)),
                pl.BlockSpec((b_blk, N, N), lambda i: (i, 0, 0)),
                pl.BlockSpec((ROWS, COL), lambda i: (0, 0)),
                pl.BlockSpec((1, COL), lambda i: (0, 0)),
            ],
            out_specs=pl.BlockSpec((b_blk, N, COL), lambda i: (i, 0, 0)),
            scratch_shapes=[pltpu.VMEM((b_blk * N, ROWS), jnp.bfloat16)],
        ),
        compiler_params=pltpu.CompilerParams(
            dimension_semantics=("parallel",),
            vmem_limit_bytes=vmem_limit,
        ),
        cost_estimate=cost,
    )(x_r, adj_bf, m_bf, bias_row)

    # back to the module's NCHW layout: out[b, o, n, l'] = out_flat[b, n, o*L_out + l']
    return jnp.transpose(out_flat.reshape(B, N, c_out, L_out), (0, 2, 1, 3))


def ref_forward(x, adj, weight4, bias, K, Kt):
    """Pure-JAX replica of the PyTorch forward, run at 'highest' f32 precision."""
    B, c_in, N, L = x.shape
    with jax.default_matmul_precision("highest"):
        L0 = jnp.broadcast_to(jnp.eye(N, dtype=x.dtype), (B, N, N))
        L1 = adj
        Ls = [L0, L1]
        for _ in range(2, K):
            L2 = 2.0 * jnp.matmul(adj, L1) - L0
            L0, L1 = L1, L2
            Ls.append(L2)
        Lap = jnp.swapaxes(jnp.stack(Ls, 1), -1, -2)
        xk = jnp.einsum("bcnl,bknq->bckql", x, Lap).reshape(B, c_in * K, N, L)
        out = jax.lax.conv_general_dilated(
            xk, weight4, window_strides=(1, 1), padding=((0, 0), (1, 1)),
            dimension_numbers=("NCHW", "OIHW", "NCHW"),
        )
    return out + bias.reshape(1, -1, 1, 1)


if __name__ == "__main__":
    B, c_in, c_out, N, L = 8, 4, 8, 16, 16
    K, Kt = 3, 3

    key = jax.random.PRNGKey(0)
    kx, ka, kw, kb = jax.random.split(key, 4)
    x = jax.random.normal(kx, (B, c_in, N, L), dtype=jnp.float32)
    adj = jax.random.normal(ka, (B, N, N), dtype=jnp.float32) * 0.2
    weight4 = jax.random.normal(kw, (c_out, K * c_in, 1, Kt), dtype=jnp.float32) * 0.1
    bias = jax.random.normal(kb, (c_out,), dtype=jnp.float32) * 0.1

    weight3 = weight4[:, :, 0, :]            # [c_out, K*c_in, Kt]

    out = jax.block_until_ready(t_cheby_conv_ds(x, adj, weight3, bias, K=K, Kt=Kt))
    ref = jax.block_until_ready(ref_forward(x, adj, weight4, bias, K, Kt))

    assert out.shape == ref.shape, (out.shape, ref.shape)
    max_err = float(jnp.max(jnp.abs(out - ref)))
    # bf16 streamed inputs / MXU with f32 accumulation -> relaxed tolerance vs f32 ref.
    assert jnp.allclose(out, ref, rtol=5e-2, atol=5e-2), max_err
    print("KERNEL_OK")
</pallas_src>

<mosaic_0001>
module attributes {stable_mosaic.version = 11 : i64} {
  func.func @_cheby_tconv_kernel(%arg0: i32, %arg1: memref<2x16x64xbf16, #tpu.memory_space<vmem>>, %arg2: memref<2x16x16xbf16, #tpu.memory_space<vmem>>, %arg3: memref<192x128xbf16, #tpu.memory_space<vmem>>, %arg4: memref<1x128xf32, #tpu.memory_space<vmem>>, %arg5: memref<2x16x128xf32, #tpu.memory_space<vmem>>, %arg6: memref<32x192xbf16, #tpu.memory_space<vmem>>) attributes {dimension_semantics = [#tpu.dimension_semantics<parallel>], iteration_bounds = array<i64: 4>, scalar_prefetch = 0 : i64, scratch_operands = 1 : i64, tpu.core_type = #tpu.core_type<tc>, window_params = [{transform_indices = @transform_0, window_bounds = array<i64: 2, 16, 64>}, {transform_indices = @transform_1, window_bounds = array<i64: 2, 16, 16>}, {pipeline_mode = #tpu.pipeline_mode<synchronous>, transform_indices = @transform_2, window_bounds = array<i64: 192, 128>}, {pipeline_mode = #tpu.pipeline_mode<synchronous>, transform_indices = @transform_3, window_bounds = array<i64: 1, 128>}, {transform_indices = @transform_4, window_bounds = array<i64: 2, 16, 128>}]} {
    %c0 = arith.constant 0 : index
    %c0_0 = arith.constant 0 : index
    %c0_1 = arith.constant 0 : index
    %0 = vector.load %arg1[%c0, %c0_0, %c0_1] : memref<2x16x64xbf16, #tpu.memory_space<vmem>>, vector<2x16x64xbf16>
    %c0_2 = arith.constant 0 : index
    %c0_3 = arith.constant 0 : index
    %c0_4 = arith.constant 0 : index
    %1 = vector.load %arg2[%c0_2, %c0_3, %c0_4] : memref<2x16x16xbf16, #tpu.memory_space<vmem>>, vector<2x16x16xbf16>
    %2 = vector.shape_cast %0 : vector<2x16x64xbf16> to vector<32x64xbf16>
    %c0_5 = arith.constant 0 : index
    %c0_6 = arith.constant 0 : index
    %3 = vector.load %arg6[%c0_5, %c0_6] : memref<32x192xbf16, #tpu.memory_space<vmem>>, vector<32x64xbf16>
    tpu.vector_store %arg6[%c0_5, %c0_6], %2 {strides = array<i32>} : memref<32x192xbf16, #tpu.memory_space<vmem>>, vector<32x64xbf16>,
    "tpu.trace_start"() <{level = 10 : i32, message = "bij,bjk->bik"}> : () -> ()
    %cst = arith.constant dense<0.000000e+00> : vector<2x16x64xf32>
    %4 = tpu.matmul %1, %0, %cst {dimension_numbers = #tpu.dot_dimension_numbers<[2], [1], [1], [2], [0, 0, 0, 1, 1, 2], [0], [0]>} : vector<2x16x16xbf16>, vector<2x16x64xbf16>, vector<2x16x64xf32> -> vector<2x16x64xf32>
    "tpu.trace_stop"() : () -> ()
    %5 = arith.truncf %4 : vector<2x16x64xf32> to vector<2x16x64xbf16>
    %6 = vector.shape_cast %5 : vector<2x16x64xbf16> to vector<32x64xbf16>
    %c0_7 = arith.constant 0 : index
    %c64 = arith.constant 64 : index
    %7 = vector.load %arg6[%c0_7, %c64] : memref<32x192xbf16, #tpu.memory_space<vmem>>, vector<32x64xbf16>
    tpu.vector_store %arg6[%c0_7, %c64], %6 {strides = array<i32>} : memref<32x192xbf16, #tpu.memory_space<vmem>>, vector<32x64xbf16>,
    %8 = arith.extf %0 : vector<2x16x64xbf16> to vector<2x16x64xf32>
    %9 = arith.truncf %4 : vector<2x16x64xf32> to vector<2x16x64xbf16>
    "tpu.trace_start"() <{level = 10 : i32, message = "bij,bjk->bik"}> : () -> ()
    %cst_8 = arith.constant dense<0.000000e+00> : vector<2x16x64xf32>
    %10 = tpu.matmul %1, %9, %cst_8 {dimension_numbers = #tpu.dot_dimension_numbers<[2], [1], [1], [2], [0, 0, 0, 1, 1, 2], [0], [0]>} : vector<2x16x16xbf16>, vector<2x16x64xbf16>, vector<2x16x64xf32> -> vector<2x16x64xf32>
    "tpu.trace_stop"() : () -> ()
    %cst_9 = arith.constant 2.000000e+00 : f32
    %11 = vector.broadcast %cst_9 : f32 to vector<2x16x64xf32>
    %12 = arith.mulf %11, %10 : vector<2x16x64xf32>
    %13 = arith.subf %12, %8 : vector<2x16x64xf32>
    %14 = arith.truncf %13 : vector<2x16x64xf32> to vector<2x16x64xbf16>
    %15 = vector.shape_cast %14 : vector<2x16x64xbf16> to vector<32x64xbf16>
    %c0_10 = arith.constant 0 : index
    %c128 = arith.constant 128 : index
    %16 = vector.load %arg6[%c0_10, %c128] : memref<32x192xbf16, #tpu.memory_space<vmem>>, vector<32x64xbf16>
    tpu.vector_store %arg6[%c0_10, %c128], %15 {strides = array<i32>} : memref<32x192xbf16, #tpu.memory_space<vmem>>, vector<32x64xbf16>,
    %c0_11 = arith.constant 0 : index
    %c0_12 = arith.constant 0 : index
    %17 = vector.load %arg6[%c0_11, %c0_12] : memref<32x192xbf16, #tpu.memory_space<vmem>>, vector<32x192xbf16>
    %c0_13 = arith.constant 0 : index
    %c0_14 = arith.constant 0 : index
    %18 = vector.load %arg3[%c0_13, %c0_14] : memref<192x128xbf16, #tpu.memory_space<vmem>>, vector<192x128xbf16>
    %cst_15 = arith.constant dense<0.000000e+00> : vector<32x128xf32>
    %19 = tpu.matmul %17, %18, %cst_15 {dimension_numbers = #tpu.dot_dimension_numbers<[1], [0], [0], [1], [0, 0, 1, 1], [], []>} : vector<32x192xbf16>, vector<192x128xbf16>, vector<32x128xf32> -> vector<32x128xf32>
    %c0_16 = arith.constant 0 : index
    %c0_17 = arith.constant 0 : index
    %20 = vector.load %arg4[%c0_16, %c0_17] : memref<1x128xf32, #tpu.memory_space<vmem>>, vector<1x128xf32>
    %21 = vector.broadcast %20 : vector<1x128xf32> to vector<32x128xf32>
    %22 = arith.addf %19, %21 : vector<32x128xf32>
    %23 = vector.shape_cast %22 : vector<32x128xf32> to vector<2x16x128xf32>
    %c0_18 = arith.constant 0 : index
    %c0_19 = arith.constant 0 : index
    %c0_20 = arith.constant 0 : index
    %24 = vector.load %arg5[%c0_18, %c0_19, %c0_20] : memref<2x16x128xf32, #tpu.memory_space<vmem>>, vector<2x16x128xf32>
    tpu.vector_store %arg5[%c0_18, %c0_19, %c0_20], %23 {strides = array<i32>} : memref<2x16x128xf32, #tpu.memory_space<vmem>>, vector<2x16x128xf32>,
    return
  }
  func.func @transform_0(%arg0: i32) -> (i32, i32, i32) {
    %c0_i32 = arith.constant 0 : i32
    %c0_i32_0 = arith.constant 0 : i32
    %c0_i32_1 = arith.constant 0 : i32
    return %arg0, %c0_i32, %c0_i32_0 : i32, i32, i32
  }
  func.func @transform_1(%arg0: i32) -> (i32, i32, i32) {
    %c0_i32 = arith.constant 0 : i32
    %c0_i32_0 = arith.constant 0 : i32
    %c0_i32_1 = arith.constant 0 : i32
    return %arg0, %c0_i32, %c0_i32_0 : i32, i32, i32
  }
  func.func @transform_2(%arg0: i32) -> (i32, i32) {
    %c0_i32 = arith.constant 0 : i32
    %c0_i32_0 = arith.constant 0 : i32
    %c0_i32_1 = arith.constant 0 : i32
    return %c0_i32, %c0_i32_0 : i32, i32
  }
  func.func @transform_3(%arg0: i32) -> (i32, i32) {
    %c0_i32 = arith.constant 0 : i32
    %c0_i32_0 = arith.constant 0 : i32
    %c0_i32_1 = arith.constant 0 : i32
    return %c0_i32, %c0_i32_0 : i32, i32
  }
  func.func @transform_4(%arg0: i32) -> (i32, i32, i32) {
    %c0_i32 = arith.constant 0 : i32
    %c0_i32_0 = arith.constant 0 : i32
    %c0_i32_1 = arith.constant 0 : i32
    return %arg0, %c0_i32, %c0_i32_0 : i32, i32, i32
  }
}

</mosaic_0001>

<bundles_post_ra>
// kernel: tpu_custom_call.1
= control target key start
LH: loop header
LB: loop body
LE: loop exit
PB: predicated region body
PF: predicated region fallthrough
CT: control target
= control target key end

     0   :  { %s1505_s0 = inlined_call_operand.hbm [shape: bf16[8,16,64], index: 0, kind: input, shape index: {}]   ;;  %s1506_s1 = inlined_call_operand.hbm [shape: bf16[8,16,16], index: 1, kind: input, shape index: {}]   ;;  %s1507_s2 = inlined_call_operand.hbm [shape: bf16[192,128], index: 2, kind: input, shape index: {}]   ;;  %s1508_s3 = inlined_call_operand.vmem [shape: f32[1,128], index: 3, kind: input, shape index: {}]   ;;  %s1509_s4 = inlined_call_operand.hbm [shape: f32[8,16,128], index: 4, kind: output, shape index: {}]  }
   0x1   :  { %1517 = sst [smem:[#allocation15_spill]] %s1505_s0 }
   0x2   :  { %1518 = sst [smem:[#allocation16_spill]] %s1507_s2 }
   0x3   :  { %9 = vsyncpa [#allocation4], 0 }
   0x4   :  { %11 = vsyncpa [#allocation4 + $0x1], 0 }
   0x5   :  { %12 = vsyncpa [#allocation7], 0 }
   0x6   :  { %14 = vsyncpa [#allocation7 + $0x1], 0 }
   0x7   :  { %15 = vsyncpa [#allocation5], 0 }
   0x8   :  { %17 = vsyncpa [#allocation5 + $0x1], 0  ;;  %s1236_s15 = smov 0   ;;  %s1238_s16 = smov 0  }
   0x9   :  { %s1240_s17 = smov 0   ;;  %s1242_s18 = smov 0  }
   0xa LB: > { %s1257_s19 = sadd.s32 4294967295, %s1197_s18   ;;  %s848_s20 = sadd.s32 4294967294, %s1197_s18   ;;  %s1197_s18 = sphi %s1242_s18, %s1540_s18   ;;  %s1193_s17 = sphi %s1240_s17, %s1539_s17   ;;  %s1189_s16 = sphi %s1238_s16, %s1538_s16   ;;  %s1185_s15 = sphi %s1236_s15, %s1537_s15  }
   0xb   : > { %p43_p0 = scmp.ne.s32.totalorder %s1189_s16, %s1185_s15  ;;  %p1514_p1 = scmp.eq.s32.totalorder %s1257_s19, 0 }
   0xc   : > { %p141_p3 = scmp.eq.s32.totalorder %s848_s20, 3  ;;  %p849_p5 = scmp.ge.s32.totalorder %s1197_s18, 1 }
   0xd   : > { %p1266_p4 = por %p1514_p1, %p43_p0  ;;  %p148_p7 = scmp.lt.s32.totalorder %s1197_s18, 5 }
   0xe   : > { %p1271_p6 = por %p141_p3, %p43_p0  ;;  %s1199_s24 = smov [#allocation8]  }
   0xf   : > { %s1519_s21 = scalar_select %p1266_p4, 1, 0 }
  0x10   : > { %s1520_s22 = scalar_select %p1271_p6, 1, 0 }
  0x11   : > { %p1276_p8 = pnand %p849_p5, %p148_p7  ;;  %s160_s25 = sshll.u32 %s1199_s24, 4  ;;  %s161_s25 = int_to_ptr.vmem [resolvable:$true] %s160_s25 }
  0x12   : > { %s1289_s27 = sadd.s32 1, %s1197_s18   ;;  %s30_s28 = sadd.s32 1, %s1193_s17 }
  0x13   : > { %p962_p9 = pneg %p1276_p8  ;;  %s27_s29 = ssub.s32 %s1197_s18, %s1289_s27 }
  0x14   : > { %s1054_s30 = scalar_lea.vmem %s161_s25, 1536  ;;  %p1062_p3 = scmp.lt.s32.totalorder %s161_s25, %s161_s25 }
  0x15   : > { %p1284_p10 = pnand %p962_p9, %p1514_p1  ;;  %p1055_p12 = scmp.ne.s32.totalorder %s161_s25, %s1054_s30 }
  0x16   : > { %p1063_p5 = scmp.lt.s32.totalorder %s1054_s30, %s1054_s30 }
  0x17   : > { %p1045_p11 = pneg %p1284_p10 }
  0x18   : > { %p1064_p7 = por %p1063_p5, %p1062_p3 }
  0x19   : > { %p1057_p13 = pnand %p1055_p12, %p1045_p11 }
  0x1b   : > { %p1058_p0 = pneg %p1057_p13 }
  0x1d   : > { %p1065_p2 = pnand %p1064_p7, %p1058_p0 }
  0x1f   : > { %1068 = shalt.err (!%p1065_p2)
}
  0x20   : > { %s1510_s5 = smov 64   ;;  %s1512_s6 = smov 4  }
  0x21   : > { %s1523_s2 = sld [smem:[#allocation16_spill]]  ;;  %p28_p2 = scmp.eq.s32.totalorder %s27_s29, 0 }
  0x22   : > { %p37_p9 = scmp.ne.s32.totalorder %s1193_s17, %s1189_s16  ;;  %p38_p11 = scmp.eq.s32.totalorder %s1197_s18, 0 }
  0x23   : > { %p978_p12 = scmp.lt.s32.totalorder %s1197_s18, 4  ;;  %p1525_p0 = scmp.eq.s32.totalorder %s1257_s19, 3 }
  0x24   : > { %s1309_s9 = scalar_select %p28_p2, %s1193_s17, %s30_s28  }
  0x25   : > { %p39_p13 = por %p38_p11, %p37_p9  ;;  %p1313_p3 = por %p1525_p0, %p37_p9 }
  0x26   : > { %1524 = sst [smem:[#allocation14_spill]] %s1309_s9  ;;  %s177_s11 = sand.u32 1, %s1193_s17  }
  0x27   : > { %965 = dma.hbm_to_vmem [thread:$0]  (!%p1284_p10), %s1523_s2, 1536, %s161_s25, [#allocation7], %s1510_s5, %s1510_s5, %s1512_s6  }
  0x28   : > { %s1526_s10 = scalar_select %p1313_p3, 1, 0 }
  0x29   : > { %s907_s12 = sshll.u32 %s1197_s18, 8  ;;  %s1319_s13 = sshll.u32 %s177_s11, 4 }
  0x2a   : > { %s1527_s0 = sld [smem:[#allocation15_spill]]  ;;  %s181_s25 = scalar_lea.vmem [#allocation3], %s1319_s13 }
  0x2b   : > { %s189_s26 = sshll.u32 %s181_s25, 4  ;;  %p1327_p10 = pnand %p978_p12, %p39_p13  ;;  %s1331_s26 = int_to_ptr.vmem [resolvable:$true] %s189_s26 }
  0x2c   : > { %s1336_s7 = scalar_lea.hbm %s1506_s1, %s907_s12  ;;  %s1338_s8 = scalar_lea.sflag [#allocation4], %s177_s11 }
  0x2d   : > { %p1071_p7 = pneg %p1327_p10 }
  0x30   : > { %s1324_s24 = scalar_lea.hbm %s1527_s0, %s907_s12  ;;  %s1074_s5 = scalar_lea.hbm %s1527_s0, 1024 }
  0x31   : > { %s1069_s14 = scalar_lea.hbm %s1324_s24, 256  ;;  %p1075_p11 = scmp.lt.s32.totalorder %s1324_s24, %s1527_s0 }
  0x32   : > { %p1070_p5 = scmp.ne.s32.totalorder %s1324_s24, %s1069_s14  ;;  %p1076_p12 = scmp.lt.s32.totalorder %s1074_s5, %s1069_s14 }
  0x34   : > { %p1072_p2 = pnand %p1071_p7, %p1070_p5  ;;  %p1077_p13 = por %p1076_p12, %p1075_p11 }
  0x36   : > { %p1073_p9 = pneg %p1072_p2 }
  0x38   : > { %p1078_p0 = pnand %p1077_p13, %p1073_p9 }
  0x3a   : > { %1081 = shalt.err (!%p1078_p0)
}
  0x3b   : > { %s1082_s11 = scalar_lea.vmem %s1331_s26, 256  ;;  %s1202_s12 = smov [#allocation3]  }
  0x3c   : > { %p1083_p1 = scmp.ne.s32.totalorder %s1331_s26, %s1082_s11  ;;  %s1087_s29 = sshll.u32 %s1202_s12, 4  ;;  %s1088_s29 = int_to_ptr.vmem [resolvable:$false] %s1087_s29 }
  0x3d   : > { %s1089_s30 = scalar_lea.vmem %s1088_s29, 512  ;;  %p1090_p6 = scmp.lt.s32.totalorder %s1331_s26, %s1088_s29 }
  0x3e   : > { %p1085_p5 = pnand %p1083_p1, %p1071_p7  ;;  %p1091_p3 = scmp.lt.s32.totalorder %s1089_s30, %s1082_s11 }
  0x40   : > { %p1086_p2 = pneg %p1085_p5  ;;  %p1092_p4 = por %p1091_p3, %p1090_p6 }
  0x42   : > { %p1093_p11 = pnand %p1092_p4, %p1086_p2 }
  0x44   : > { %1096 = shalt.err (!%p1093_p11)
}
  0x45   : > { %s1529_s2 = smov 4   ;;  %s1530_s5 = smov 64  }
  0x46   : > { %969 = dma.hbm_to_vmem [thread:$0]  (!%p1327_p10), %s1324_s24, 256, %s1331_s26, %s1338_s8, %s1530_s5, %s1530_s5, %s1529_s2  }
  0x47   : > { %s203_s6 = scalar_lea.vmem [#allocation6], %s1319_s13  ;;  %s199_s20 = sand.u32 1, %s1197_s18  }
  0x48   : > { %s211_s14 = sshll.u32 %s203_s6, 4  ;;  %s200_s25 = scalar_lea.sflag [#allocation7], %s199_s20  ;;  %s1370_s14 = int_to_ptr.vmem [resolvable:$true] %s211_s14 }
  0x49   : > { %s1097_s11 = scalar_lea.hbm %s1336_s7, 256  ;;  %s1102_s30 = scalar_lea.hbm %s1506_s1, 1024 }
  0x4a   : > { %p1098_p1 = scmp.ne.s32.totalorder %s1336_s7, %s1097_s11  ;;  %p1103_p3 = scmp.lt.s32.totalorder %s1336_s7, %s1506_s1 }
  0x4b   : > { %p1104_p9 = scmp.lt.s32.totalorder %s1102_s30, %s1097_s11 }
  0x4c   : > { %p1100_p4 = pnand %p1098_p1, %p1071_p7 }
  0x4d   : > { %p1105_p12 = por %p1104_p9, %p1103_p3 }
  0x4e   : > { %p1101_p6 = pneg %p1100_p4 }
  0x50   : > { %p1106_p13 = pnand %p1105_p12, %p1101_p6 }
  0x52   : > { %1109 = shalt.err (!%p1106_p13)
}
  0x53   : > { %s1110_s13 = scalar_lea.vmem %s1370_s14, 256  ;;  %s1203_s24 = smov [#allocation6]  }
  0x54   : > { %p1111_p0 = scmp.ne.s32.totalorder %s1370_s14, %s1110_s13  ;;  %s1115_s26 = sshll.u32 %s1203_s24, 4  ;;  %s1116_s26 = int_to_ptr.vmem [resolvable:$false] %s1115_s26 }
  0x55   : > { %s1117_s8 = scalar_lea.vmem %s1116_s26, 512  ;;  %p1118_p11 = scmp.lt.s32.totalorder %s1370_s14, %s1116_s26 }
  0x56   : > { %p1113_p5 = pnand %p1111_p0, %p1071_p7  ;;  %p1119_p1 = scmp.lt.s32.totalorder %s1117_s8, %s1110_s13 }
  0x58   : > { %p1114_p2 = pneg %p1113_p5  ;;  %p1120_p4 = por %p1119_p1, %p1118_p11 }
  0x5a   : > { %p1121_p3 = pnand %p1120_p4, %p1114_p2 }
  0x5c   : > { %1124 = shalt.err (!%p1121_p3)
}
  0x5d   : > { %972 = dma.hbm_to_vmem [thread:$0]  (!%p1327_p10), %s1336_s7, 256, %s1370_s14, %s200_s25, %s1530_s5, %s1530_s5, %s1529_s2  }
  0x5e   : > { %223 = sbr.rel (%p1276_p8) target bundleno = 748 (0x2ec), region = 36  ;;  %s1400_s0 = sand.u32 (!%p1276_p8), 1, %s1189_s16  }
  0x5f   : > { %s861_s9 = sshll.u32 (!%p1276_p8), %s1400_s0, 4  ;;  %s226_s6 = scalar_lea.sflag (!%p1276_p8), [#allocation4], %s1400_s0 }
  0x60   : > { %s229_s20 = scalar_lea.vmem (!%p1276_p8), [#allocation3], %s861_s9  ;;  %p1531_p7 = scmp.ne.s32.totalorder (!%p1276_p8), %s1519_s21, 0 }
  0x63   : > { %1168 = dma.done.wait (%p1531_p7), %s226_s6, 256  }
  0x64   : > { %1170 = vsyncadd (%p1531_p7), %s226_s6, 4294967040  ;;  %s234_s28 = sand.u32 1, %s1257_s19   ;;  %s238_s23 = scalar_lea.vmem [#allocation6], %s861_s9 }
  0x65   : > { %s235_s7 = scalar_lea.sflag [#allocation7], %s234_s28 }
  0x66   : > { %1172 = dma.done.wait (%p1531_p7), %s235_s7, 256  }
  0x67   : > { %1174 = vsyncadd (%p1531_p7), %s235_s7, 4294967040  ;;  %p1532_p8 = scmp.eq.s32.totalorder %s1257_s19, 0 }
  0x69   : > { %1176 = dma.done.wait (%p1532_p8), [#allocation7], 1536   ;;  %p1533_p10 = pmov %p1532_p8 }
  0x6a   : > { %v1204_v0 = vmov 0.0   ;;  %vm1205_vm0 = vmmov 0   ;;  %vm284_vm1 = vcmask 519168   ;;  %v1418_v1 = vld [vmem:[%s229_s20] sm:$0xf]  ;;  %vm300_vm2 = vcmask 130048  }
  0x6b   : > { %1178 = vsyncadd (%p1533_p10), [#allocation7], 4294965760  ;;  %928 = vmatprep.subr.bf16.mxu1 %v1204_v0  ;;  %930 = vmatprep.mubr.msk.bf16.mxu1 %vm1205_vm0, %v1204_v0  ;;  %v1420_v2 = vld [vmem:[%s229_s20 + $0x4] sm:$0xf]  ;;  %285 = vst.msk [vmem:[#allocation2] sm:$0xf] %vm284_vm1, %v1418_v1  ;;  %v429_v40 = vunpack.c.l.bf16 %v1418_v1 }
  0x6c   : > { %286 = vst.msk [vmem:[#allocation2 + $0x8] sm:$0xf] %vm284_vm1, %v1420_v2  ;;  %v866_v3 = vcombine.low %v1418_v1, %v1420_v2  ;;  %v1022_v4 = vld [vmem:[%s238_s23] sm:$0xff]   ;;  %v1428_v5 = vld [vmem:[%s229_s20 + $0x8] sm:$0xf]  ;;  %s1206_s21 = smov 64   ;;  %v430_v45 = vunpack.c.l.bf16 %v1420_v2 }
  0x6d   : > { %v1430_v6 = vld [vmem:[%s229_s20 + $0xc] sm:$0xf]  ;;  %287 = vst.msk [vmem:[#allocation2 + $0x10] sm:$0xf] %vm284_vm1, %v1428_v5  ;;  %v1207_v13 = vmov 0   ;;  %v1026_v15 = vld [vmem:[#allocation8 + $0x30] sm:$0xff]   ;;  %v431_v51 = vunpack.c.l.bf16 %v1428_v5 }
  0x6e   : > { %929 = vmatpush3.bf16.msra.mxu1 %v866_v3  ;;  %v869_v7 = vcombine.low %v1428_v5, %v1430_v6  ;;  %288 = vst.msk [vmem:[#allocation2 + $0x18] sm:$0xf] %vm284_vm1, %v1430_v6  ;;  %v1024_v8 = vld [vmem:[%s238_s23 + $0x8] sm:$0xff]   ;;  %675 = vmatprep.subr.bf16.mxu0 %v1207_v13  ;;  %v1028_v24 = vld [vmem:[#allocation8 + $0x20] sm:$0xff]   ;;  %v1030_v29 = vld [vmem:[#allocation8 + $0x10] sm:$0xff]   ;;  %vm424_vm3 = vcmask 1043968   ;;  %v432_v57 = vunpack.c.l.bf16 %v1430_v6 }
  0x6f   : > { %934 = vmatprep.subr.bf16.mxu1 %v1204_v0  ;;  %v1025_v12 = vld [vmem:[#allocation8 + $0x38] sm:$0xff]   ;;  %v1027_v20 = vld [vmem:[#allocation8 + $0x28] sm:$0xff]   ;;  %v1032_v31 = vld [vmem:[#allocation8] sm:$0xff]   ;;  %vm668_vm4 = vcmask 523264   ;;  %s864_s2 = sshll.u32 %s1400_s0, 5  ;;  %s919_s12 = sshll.u32 %s1257_s19, 9 }
  0x70   : > { %676 = vmatpush1.bf16.msra.mxu0 %v1025_v12  ;;  %v1029_v28 = vld [vmem:[#allocation8 + $0x18] sm:$0xff]   ;;  %v1031_v30 = vld [vmem:[#allocation8 + $0x8] sm:$0xff]   ;;  %v1034_v33 = vld [vmem:[#allocation8 + $0x50] sm:$0xff]   ;;  %s271_s25 = scalar_lea.vmem [#allocation9], %s864_s2  ;;  %s1463_s13 = scalar_lea.hbm %s1509_s4, %s919_s12 }
  0x71   : > { %931 = vmatmul.mubr.msk.bf16.vlgmr.msra.gmra.mxu1 %vm300_vm2, %v1022_v4  ;;  %677 = vmatprep.subr.bf16.mxu0 %v1207_v13  ;;  %v1033_v32 = vld [vmem:[#allocation8 + $0x58] sm:$0xff]   ;;  %v1035_v34 = vld [vmem:[#allocation8 + $0x48] sm:$0xff]   ;;  %v1036_v35 = vld [vmem:[#allocation8 + $0x40] sm:$0xff]   ;;  %s743_s11 = sshll.u32 %s271_s25, 4  ;;  %s729_s24 = scalar_lea.sflag [#allocation5], %s1400_s0  ;;  %s1458_s11 = int_to_ptr.vmem [resolvable:$true] %s743_s11 }
  0x72   : > { %935 = vmatpush3.bf16.msra.mxu1 %v869_v7  ;;  %936 = vmatprep.mubr.msk.bf16.mxu1 %vm1205_vm0, %v1204_v0  ;;  %s1125_s26 = scalar_lea.vmem %s1458_s11, 512  ;;  %p1534_p9 = scmp.ne.s32.totalorder %s1526_s10, 0 }
  0x73   : > { %940 = vmatprep.subr.bf16.mxu1 %v1204_v0  ;;  %p1126_p6 = scmp.ne.s32.totalorder %s1458_s11, %s1125_s26  ;;  %s1208_s19 = smov [#allocation9]  }
  0x74   : > { %678 = vmatpush1.bf16.msra.mxu0 %v1026_v15  ;;  %s1129_s8 = sshll.u32 %s1208_s19, 4  ;;  %s1130_s8 = int_to_ptr.vmem [resolvable:$false] %s1129_s8 }
  0x75   : > { %679 = vmatprep.subr.bf16.mxu0 %v1207_v13  ;;  %p1127_p12 = pnand %p1126_p6, %p1534_p9  ;;  %s1131_s9 = scalar_lea.vmem %s1130_s8, 1024 }
  0x76   : > { %p1132_p0 = scmp.lt.s32.totalorder %s1458_s11, %s1130_s8  ;;  %p1133_p5 = scmp.lt.s32.totalorder %s1131_s9, %s1125_s26 }
  0x77   : > { %p1128_p13 = pneg %p1127_p12 }
  0x78   : > { %680 = vmatpush1.bf16.msra.mxu0 %v1027_v20  ;;  %p1134_p2 = por %p1133_p5, %p1132_p0 }
  0x79   : > { %937 = vmatmul.mubr.msk.bf16.vlgmr.msra.gmra.mxu1 %vm300_vm2, %v1024_v8  ;;  %681 = vmatprep.subr.bf16.mxu0 %v1207_v13 }
  0x7a   : > { %942 = vmatprep.mubr.msk.bf16.mxu1 %vm1205_vm0, %v1204_v0  ;;  %p1135_p11 = pnand %p1134_p2, %p1128_p13 }
  0x7c   : > { %682 = vmatpush1.bf16.msra.mxu0 %v1028_v24 }
  0x7d   : > { %683 = vmatprep.subr.bf16.mxu0 %v1207_v13 }
  0x80   : > { %684 = vmatpush1.bf16.msra.mxu0 %v1029_v28 }
  0x81   : > { %685 = vmatprep.subr.bf16.mxu0 %v1207_v13 }
  0x84   : > { %686 = vmatpush1.bf16.msra.mxu0 %v1030_v29 }
  0x85   : > { %687 = vmatprep.subr.bf16.mxu0 %v1207_v13 }
  0x88   : > { %688 = vmatpush1.bf16.msra.mxu0 %v1031_v30 }
  0x89   : > { %689 = vmatprep.subr.bf16.mxu0 %v1207_v13 }
  0x8c   : > { %690 = vmatpush1.bf16.msra.mxu0 %v1032_v31 }
  0x8d   : > { %699 = vmatprep.subr.bf16.mxu0 %v1207_v13 }
  0x90   : > { %700 = vmatpush2.bf16.msra.mxu0 %v1033_v32 }
  0x91   : > { %701 = vmatprep.subr.bf16.mxu0 %v1207_v13 }
  0x94   : > { %702 = vmatpush2.bf16.msra.mxu0 %v1034_v33 }
  0x95   : > { %703 = vmatprep.subr.bf16.mxu0 %v1207_v13 }
  0x98   : > { %704 = vmatpush2.bf16.msra.mxu0 %v1035_v34 }
  0x99   : > { %705 = vmatprep.subr.bf16.mxu0 %v1207_v13 }
  0x9c   : > { %706 = vmatpush2.bf16.msra.mxu0 %v1036_v35 }
 0x131   : > { %v338_v9 = vpop.f32.mrf.mxu1 }
 0x132   : > { %v910_v10 = vpack.c.bf16 %v338_v9, %v338_v9 }
 0x133   : > { %v932_v11 = vpop.f32.mrf.mxu1 }
 0x134   : > { %412 = vrot.lane.b32.xlu0 %v910_v10, %s1206_s21 }
 0x135   : > { %v341_v14 = vpop.f32.mrf.mxu1 }
 0x136   : > { %v400_v16 = vpack.c.bf16 %v341_v14, %v338_v9  ;;  %v911_v17 = vpack.c.bf16 %v341_v14, %v341_v14 }
 0x137   : > { %v933_v18 = vpop.f32.mrf.mxu1 }
 0x138   : > { %414 = vrot.lane.b32.xlu0 %v911_v17, %s1206_s21  ;;  %941 = vmatpush3.bf16.msra.mxu1 %v400_v16 }
 0x139   : > { %v393_v19 = vpop.f32.mrf.mxu1  ;;  %946 = vmatprep.subr.bf16.mxu1 %v1204_v0 }
 0x13a   : > { %v912_v21 = vpack.c.bf16 %v393_v19, %v393_v19 }
 0x13b   : > { %v938_v22 = vpop.f32.mrf.mxu1  ;;  %943 = vmatmul.mubr.msk.bf16.vlgmr.msra.gmra.mxu1 %vm300_vm2, %v1022_v4  ;;  %v881_v4 = vld [vmem:[%s1508_s3] ss:$0 sm:$0xff] }
 0x13c   : > { %416 = vrot.lane.b32.xlu1 %v912_v21, %s1206_s21  ;;  %948 = vmatprep.mubr.msk.bf16.mxu1 %vm1205_vm0, %v1204_v0 }
 0x13d   : > { %v396_v23 = vpop.f32.mrf.mxu1 }
 0x13e   : > { %v401_v25 = vpack.c.bf16 %v396_v23, %v393_v19  ;;  %v913_v26 = vpack.c.bf16 %v396_v23, %v396_v23 }
 0x13f   : > { %v939_v27 = vpop.f32.mrf.mxu1 }
 0x140   : > { %418 = vrot.lane.b32.xlu1 %v913_v26, %s1206_s21  ;;  %947 = vmatpush3.bf16.msra.mxu1 %v401_v25 }
 0x143   : > { %949 = vmatmul.mubr.msk.bf16.vlgmr.msra.gmra.mxu1 %vm300_vm2, %v1024_v8 }
 0x1a6   : > { %v413_v36 = vpop.permute.xlu0 %412 }
 0x1a7   : > { %425 = vst.msk [vmem:[#allocation2] sm:$0xf] %vm424_vm3, %v413_v36 }
 0x1aa   : > { %v415_v37 = vpop.permute.xlu0 %414 }
 0x1ab   : > { %426 = vst.msk [vmem:[#allocation2 + $0x8] sm:$0xf] %vm424_vm3, %v415_v37 }
 0x1ae   : > { %v417_v38 = vpop.permute.xlu1 %416 }
 0x1af   : > { %427 = vst.msk [vmem:[#allocation2 + $0x10] sm:$0xf] %vm424_vm3, %v417_v38 }
 0x1b2   : > { %v419_v39 = vpop.permute.xlu1 %418  ;;  %v1037_v0 = vld [vmem:[#allocation2] ss:$8 sps:$4 sm:$0xff]  }
 0x1b3   : > { %428 = vst.msk [vmem:[#allocation2 + $0x18] sm:$0xf] %vm424_vm3, %v419_v39 }
 0x1ba   : > { %v1042_v3 = vld [vmem:[#allocation2 + $0x10] ss:$8 sps:$4 sm:$0xff]  }
 0x1fb   : > { %v467_v41 = vpop.f32.mrf.mxu1 }
 0x1fc   : > { %v515_v42 = vmul.f32 2.0, %v467_v41 }
 0x1fd   : > { %v944_v43 = vpop.f32.mrf.mxu1 }
 0x1fe   : > { %v519_v44 = vsub.f32 %v515_v42, %v429_v40 }
 0x1ff   : > { %v470_v46 = vpop.f32.mrf.mxu1 }
 0x200   : > { %v914_v47 = vpack.c.bf16 %v519_v44, %v519_v44  ;;  %v516_v48 = vmul.f32 2.0, %v470_v46 }
 0x201   : > { %v945_v49 = vpop.f32.mrf.mxu1 }
 0x202   : > { %539 = vst.msk [vmem:[#allocation2 + $0x4] sm:$0xf] %vm284_vm1, %v914_v47  ;;  %v520_v50 = vsub.f32 %v516_v48, %v430_v45 }
 0x203   : > { %v508_v52 = vpop.f32.mrf.mxu1 }
 0x204   : > { %v915_v53 = vpack.c.bf16 %v520_v50, %v520_v50  ;;  %v517_v54 = vmul.f32 2.0, %v508_v52 }
 0x205   : > { %v950_v55 = vpop.f32.mrf.mxu1 }
 0x206   : > { %540 = vst.msk [vmem:[#allocation2 + $0xc] sm:$0xf] %vm284_vm1, %v915_v53  ;;  %v521_v56 = vsub.f32 %v517_v54, %v431_v51 }
 0x207   : > { %v511_v58 = vpop.f32.mrf.mxu1 }
 0x208   : > { %v916_v59 = vpack.c.bf16 %v521_v56, %v521_v56  ;;  %v518_v60 = vmul.f32 2.0, %v511_v58 }
 0x209   : > { %v951_v61 = vpop.f32.mrf.mxu1 }
 0x20a   : > { %541 = vst.msk [vmem:[#allocation2 + $0x14] sm:$0xf] %vm284_vm1, %v916_v59  ;;  %v522_v62 = vsub.f32 %v518_v60, %v432_v57 }
 0x20c   : > { %v917_v63 = vpack.c.bf16 %v522_v62, %v522_v62 }
 0x20d   : > { %v1039_v1 = vld [vmem:[#allocation2 + $0x4] ss:$8 sps:$4 sm:$0xff]  }
 0x20e   : > { %542 = vst.msk [vmem:[#allocation2 + $0x1c] sm:$0xf] %vm284_vm1, %v917_v63  ;;  %898 = vmatprep.mubr.msk.bf16.mxu0 %vm668_vm4, %v1039_v1 }
 0x20f   : > { %708 = vmatmul.mubr.bf16.vlgmr.msra.gmra.mxu0 %v1037_v0 }
 0x215   : > { %v1040_v2 = vld [vmem:[#allocation2 + $0x14] ss:$8 sps:$4 sm:$0xff]  }
 0x216   : > { %899 = vmatprep.mubr.msk.bf16.mxu0 %vm668_vm4, %v1040_v2 }
 0x217   : > { %716 = vmatmul.mubr.bf16.gmra.mxu0 %v1042_v3 }
 0x2cf   : > { %v709_v5 = vpop.f32.mrf.mxu0 }
 0x2d0   : > { %v710_v6 = vadd.f32 %v881_v4, %v709_v5 }
 0x2d1   : > { %v711_v7 = vpop.f32.mrf.mxu0 }
 0x2d2   : > { %724 = vst [vmem:[%s271_s25] sm:$0xff] %v710_v6 }
 0x2d3   : > { %v712_v8 = vpop.f32.mrf.mxu0 }
 0x2d4   : > { %v713_v9 = vadd.f32 %v881_v4, %v712_v8 }
 0x2d5   : > { %v714_v10 = vpop.f32.mrf.mxu0 }
 0x2d6   : > { %725 = vst [vmem:[%s271_s25 + $0x8] sm:$0xff] %v713_v9 }
 0x2d7   : > { %v717_v11 = vpop.f32.mrf.mxu0 }
 0x2d8   : > { %v718_v12 = vadd.f32 %v881_v4, %v717_v11 }
 0x2d9   : > { %v719_v13 = vpop.f32.mrf.mxu0 }
 0x2da   : > { %726 = vst [vmem:[%s271_s25 + $0x10] sm:$0xff] %v718_v12 }
 0x2db   : > { %v720_v14 = vpop.f32.mrf.mxu0 }
 0x2dc   : > { %v721_v15 = vadd.f32 %v881_v4, %v720_v14 }
 0x2dd   : > { %v722_v16 = vpop.f32.mrf.mxu0 }
 0x2de   : > { %727 = vst [vmem:[%s271_s25 + $0x18] sm:$0xff] %v721_v15 }
 0x2df   : > { %1138 = shalt.err (!%p1135_p11)
}
 0x2e0   : > { %s1139_s6 = scalar_lea.hbm %s1463_s13, 512  ;;  %s1143_s7 = scalar_lea.hbm %s1509_s4, 2048 }
 0x2e1   : > { %p1140_p1 = scmp.ne.s32.totalorder %s1463_s13, %s1139_s6  ;;  %p1144_p7 = scmp.lt.s32.totalorder %s1463_s13, %s1509_s4 }
 0x2e2   : > { %p1145_p8 = scmp.lt.s32.totalorder %s1143_s7, %s1139_s6 }
 0x2e3   : > { %p1141_p4 = pnand %p1140_p1, %p1534_p9 }
 0x2e4   : > { %p1146_p10 = por %p1145_p8, %p1144_p7 }
 0x2e5   : > { %p1142_p3 = pneg %p1141_p4 }
 0x2e7   : > { %p1147_p6 = pnand %p1146_p10, %p1142_p3 }
 0x2e9   : > { %1150 = shalt.err (!%p1147_p6)
}
 0x2ea   : > { %s1209_s2 = smov 128   ;;  %s1210_s5 = smov 8  }
 0x2eb   : > { %960 = dma.vmem_to_hbm [thread:$0]  (%p1534_p9), %s1458_s11, 512, %s1463_s13, %s729_s24, %s1209_s2, %s1209_s2, %s1210_s5  }
 0x2ec PF: > { %p980_p12 = scmp.ge.s32.totalorder %s1197_s18, 2  ;;  %s758_s14 = sand.u32 1, %s1185_s15  }
 0x2ed   : > { %p1535_p13 = scmp.ne.s32.totalorder %s1520_s22, 0  ;;  %s759_s25 = scalar_lea.sflag [#allocation5], %s758_s14 }
 0x2ef   : > { %p974_p0 = pnand %p980_p12, %p1535_p13 }
 0x2f1   : > { %p975_p5 = pneg %p974_p0 }
 0x2f3   : > { %1180 = dma.done.wait (%p975_p5), %s759_s25, 512  }
 0x2f4   : > { %1182 = vsyncadd (%p975_p5), %s759_s25, 4294966784  ;;  %s1536_s12 = sld [smem:[#allocation14_spill]]  ;;  %p20_p2 = scmp.ge.s32.totalorder %s1289_s27, 6  }
 0x2f5   : > { %s1537_s15 = smov %s1189_s16  ;;  %s1538_s16 = smov %s1193_s17 }
 0x2f6   : > { %s1540_s18 = smov %s1289_s27  ;;  %22 = sbr.rel (!%p20_p2) target bundleno = 10 (0xa), region = 98 }
 0x2fa   : > { %s1539_s17 = smov %s1536_s12 }
 0x2fb   :  { %764 = vsyncpa [#allocation4], 1 }
 0x2fc   :  { %766 = vsyncpa [#allocation4 + $0x1], 1 }
 0x2fd   :  { %767 = vsyncpa [#allocation7], 1 }
 0x2fe   :  { %769 = vsyncpa [#allocation7 + $0x1], 1 }
 0x2ff   :  { %770 = vsyncpa [#allocation5], 1 }
 0x300   :  { %772 = vsyncpa [#allocation5 + $0x1], 1 }

</bundles_post_ra>
